<compile_context>
chip_gen: v7x
topology: tpu7x:2x2x1
jax: 0.10.0
libtpu: 0.0.40
codegen_flags: <defaults>
</compile_context>

<pallas_src>
import math

import jax
import jax.numpy as jnp
from jax.experimental import pallas as pl
from jax.experimental.pallas import tpu as pltpu


def _ceil_to(v, m):
    return -(-v // m) * m


def _shift_right(x):
    """y[:, j] = x[:, j-1]; y[:, 0] = 0  (lane axis)."""
    z = jnp.zeros((x.shape[0], 1), x.dtype)
    return jnp.concatenate([z, x[:, :-1]], axis=1)


def _shift_left(x):
    """y[:, j] = x[:, j+1]; y[:, -1] = 0  (lane axis)."""
    z = jnp.zeros((x.shape[0], 1), x.dtype)
    return jnp.concatenate([x[:, 1:], z], axis=1)


def up_kernel(x_ref, par_ref, nf_ref, nl_ref, w1_ref, b1_ref, w2_ref, b2_ref,
              out_ref):
    """One batch-tile per grid step.  LB lanes = b_tile batch elems x l_in.

    x_ref   : (C_inP, LB)  f32   pooled activations, batch folded into lanes.
    par_ref : (C_inP, LB)  bf16  pool-index parity (idx & 1).
    nf_ref  : (1, LB)      f32   0.0 at the first position of each batch elem.
    nl_ref  : (1, LB)      f32   0.0 at the last  position of each batch elem.
    w*_ref  : (2*C_outP, 4*C_P) bf16  [[W0 W1 W2 0],[0 W0 W1 W2]], BN folded.
    b*_ref  : (2*C_outP, 1)     f32   fused conv bias + BN shift (two copies).
    out_ref : (2, C_outP, LB)         out[0] = even stream, out[1] = odd stream.
    """
    x = x_ref[...]
    par = par_ref[...].astype(jnp.float32)
    nf = nf_ref[...]
    nl = nl_ref[...]

    # MaxUnpool1d(2) as dense even/odd streams, O(L):
    #   unpooled[2m] = even[m], unpooled[2m+1] = odd[m].
    odd = x * par
    even = x - odd

    def layer(e, o, w_ref, b_ref):
        # Neighbours across the virtual interleaved signal; the zero column of
        # the shift + the nf/nl masks reproduce Conv1d's padding=1 and keep the
        # batch elements packed along lanes independent of each other.
        o_prev = _shift_right(o) * nf
        e_next = _shift_left(e) * nl
        # bf16 operand stack -> single MXU matmul producing even & odd outputs:
        #   [[W0 W1 W2 0 ]   [o_prev]   [y_even]
        #    [0  W0 W1 W2]] @ [  e   ] = [y_odd ]
        #                     [  o   ]
        #                     [e_next]
        stack = jnp.concatenate(
            [o_prev.astype(jnp.bfloat16), e.astype(jnp.bfloat16),
             o.astype(jnp.bfloat16), e_next.astype(jnp.bfloat16)], axis=0)
        y = jnp.dot(w_ref[...], stack, preferred_element_type=jnp.float32)
        y = jnp.maximum(y + b_ref[...], 0.0)          # conv bias + BN + ReLU
        half = y.shape[0] // 2
        return y[:half], y[half:]

    e1, o1 = layer(even, odd, w1_ref, b1_ref)         # conv1 + BN1 + ReLU
    e2, o2 = layer(e1, o1, w2_ref, b2_ref)            # conv2 + BN2 + ReLU
    out_ref[0] = e2.astype(out_ref.dtype)
    out_ref[1] = o2.astype(out_ref.dtype)


def up_forward(x, indices, output_len, params):
    """Pallas implementation of Up.forward(x, indices, output_shape).

    `indices` must come from MaxPool1d(kernel_size=2, stride=2) on an
    even-length signal (indices[..., m] in {2m, 2m+1}); only the parity is used.
    """
    n, c_in, l_in = x.shape
    l_out = int(output_len)
    if l_out != 2 * l_in:
        raise ValueError("Up kernel supports MaxUnpool1d(2) with "
                         "output length == 2 * input length only.")
    w1, b1, s1, t1, w2, b2, s2, t2 = params
    c_out = w1.shape[1]

    # ---- channel padding to multiples of 16 (clean bf16 sublane layout) ----
    c_in_p = _ceil_to(c_in, 16)
    c_out_p = _ceil_to(c_out, 16)

    # ---- fold BN scale into conv weights, conv bias into BN shift; build the
    #      [[W0 W1 W2 0],[0 W0 W1 W2]] block matrix (one matmul -> even+odd) ----
    def fold(w, b, s, t, cin_p):
        ws = w * s[None]                                       # (3, Cout, Cin)
        ws = jnp.pad(ws, ((0, 0), (0, c_out_p - ws.shape[1]),
                          (0, cin_p - ws.shape[2])))
        z = jnp.zeros((c_out_p, cin_p), ws.dtype)
        wbig = jnp.concatenate(
            [jnp.concatenate([ws[0], ws[1], ws[2], z], axis=1),
             jnp.concatenate([z, ws[0], ws[1], ws[2]], axis=1)], axis=0)
        bias = jnp.pad(s * b + t, ((0, c_out_p - c_out), (0, 0)))
        bias = jnp.concatenate([bias, bias], axis=0)
        return wbig.astype(jnp.bfloat16), bias.astype(jnp.float32)

    w1f, b1f = fold(w1, b1, s1, t1, c_in_p)
    w2f, b2f = fold(w2, b2, s2, t2, c_out_p)

    # ---- batch-into-lanes tiling (large, lane-dense, VMEM-budgeted tiles) ----
    base = math.lcm(l_in, 128) // l_in             # batch elems per 128 lanes
    try:
        vmem_cap = int(pltpu.get_tpu_info().vmem_capacity_bytes)
    except Exception:                              # interpret / CPU fallback
        vmem_cap = 64 * 1024 * 1024                # v7x per-core VMEM (smallest)

    # rough VMEM bytes per lane: double-buffered in/out blocks + kernel temps
    per_lane = 36 * c_in_p + 56 * c_out_p + 16
    max_lanes = max(base * l_in, (vmem_cap // 4 // per_lane) // 128 * 128)
    target_lanes = min(2048, max_lanes)
    b_tile = base * max(1, target_lanes // (base * l_in))
    cover = _ceil_to(n, base)                      # one step covering the batch
    b_tile = min(b_tile, cover)                    # never pad batch past 1 block
    if b_tile == cover and cover > base:           # keep >=2 grid steps (v7x)
        b_tile = max(base, _ceil_to(cover // 2, base))
    n_pad = _ceil_to(n, b_tile)
    lb = b_tile * l_in
    grid = (n_pad // b_tile,)

    w_bytes = (w1f.size + w2f.size) * 2 + (b1f.size + b2f.size) * 4
    vmem_limit = int(min(vmem_cap * 3 // 4,
                         max(32 * 1024 * 1024, 2 * (per_lane * lb + w_bytes))))

    # ---- fold (N, C, L) -> (C_P, N_pad*L): batch contiguous along lanes ----
    def fold_nl(a):
        a = jnp.pad(a, ((0, n_pad - n), (0, c_in_p - c_in), (0, 0)))
        return jnp.transpose(a, (1, 0, 2)).reshape(c_in_p, n_pad * l_in)

    xf = fold_nl(x)
    parf = fold_nl((indices % 2).astype(jnp.bfloat16))     # parity only

    # conv padding=1 edge masks; identical for every grid step
    pos = jnp.arange(lb, dtype=jnp.int32) % l_in
    nf_mask = (pos != 0).astype(jnp.float32)[None]          # (1, LB)
    nl_mask = (pos != l_in - 1).astype(jnp.float32)[None]   # (1, LB)

    out = pl.pallas_call(
        up_kernel,
        out_shape=jax.ShapeDtypeStruct((2, c_out_p, n_pad * l_in), x.dtype),
        grid_spec=pltpu.PrefetchScalarGridSpec(
            num_scalar_prefetch=0,
            grid=grid,
            in_specs=[
                pl.BlockSpec((c_in_p, lb), lambda i: (0, i)),             # x
                pl.BlockSpec((c_in_p, lb), lambda i: (0, i)),             # parity
                pl.BlockSpec((1, lb), lambda i: (0, 0)),                  # not-first
                pl.BlockSpec((1, lb), lambda i: (0, 0)),                  # not-last
                pl.BlockSpec((2 * c_out_p, 4 * c_in_p), lambda i: (0, 0)),   # W1
                pl.BlockSpec((2 * c_out_p, 1), lambda i: (0, 0)),            # b1
                pl.BlockSpec((2 * c_out_p, 4 * c_out_p), lambda i: (0, 0)),  # W2
                pl.BlockSpec((2 * c_out_p, 1), lambda i: (0, 0)),            # b2
            ],
            out_specs=pl.BlockSpec((2, c_out_p, lb), lambda i: (0, 0, i)),
        ),
        compiler_params=pltpu.CompilerParams(
            dimension_semantics=("parallel",),
            vmem_limit_bytes=vmem_limit,
        ),
    )(xf, parf, nf_mask, nl_mask, w1f, b1f, w2f, b2f)

    # ---- (2, CoutP, N_pad*L) -> (N, Cout, 2L): one fused slice + transpose ----
    out = out[:, :c_out, :].reshape(2, c_out, n_pad, l_in)[:, :, :n]
    out = jnp.transpose(out, (2, 1, 3, 0)).reshape(n, c_out, l_out)
    return out


def up_reference(x, indices, l_out, params):
    """Pure-JAX reference (PyTorch Up in eval mode); mirrors the kernel's bf16
    operand rounding with f32 accumulation."""
    w1, b1, s1, t1, w2, b2, s2, t2 = params
    onehot = (indices[..., None] ==
              jnp.arange(l_out, dtype=indices.dtype)).astype(x.dtype)
    h = jnp.einsum('ncl,nclp->ncp', x, onehot)              # MaxUnpool1d(2)

    def conv_bn_relu(h, w, b, s, t):
        wf = (w * s[None]).astype(jnp.bfloat16).astype(jnp.float32)
        hb = h.astype(jnp.bfloat16).astype(jnp.float32)
        wt = jnp.transpose(wf, (1, 2, 0))                   # (Cout, Cin, 3)
        y = jax.lax.conv_general_dilated(
            hb, wt, window_strides=(1,), padding=((1, 1),),
            dimension_numbers=('NCH', 'OIH', 'NCH'))
        return jnp.maximum(y + (s * b + t)[None], 0.0)

    h = conv_bn_relu(h, w1, b1, s1, t1)
    h = conv_bn_relu(h, w2, b2, s2, t2)
    return h


def make_params(key, c_in, c_out):
    ks = jax.random.split(key, 10)
    eps = 1e-5

    def bn_fold(kg, kb, kv, c):
        gamma = 1.0 + 0.1 * jax.random.normal(kg, (c, 1), jnp.float32)
        beta = 0.05 * jax.random.normal(kb, (c, 1), jnp.float32)
        mean = 0.02 * jnp.arange(c, dtype=jnp.float32)[:, None]
        var = 1.0 + 0.1 * jnp.abs(jax.random.normal(kv, (c, 1), jnp.float32))
        scale = gamma / jnp.sqrt(var + eps)
        shift = beta - mean * scale
        return scale, shift

    w1 = 0.2 * jax.random.normal(ks[0], (3, c_out, c_in), jnp.float32)
    b1 = 0.1 * jax.random.normal(ks[1], (c_out, 1), jnp.float32)
    s1, t1 = bn_fold(ks[2], ks[3], ks[4], c_out)
    w2 = 0.2 * jax.random.normal(ks[5], (3, c_out, c_out), jnp.float32)
    b2 = 0.1 * jax.random.normal(ks[6], (c_out, 1), jnp.float32)
    s2, t2 = bn_fold(ks[7], ks[8], ks[9], c_out)
    return (w1, b1, s1, t1, w2, b2, s2, t2)


if __name__ == "__main__":
    key = jax.random.PRNGKey(0)
    k_x, k_idx, k_p = jax.random.split(key, 3)

    N, C_IN, C_OUT, L_IN = 2, 4, 6, 8
    L_OUT = 2 * L_IN  # MaxUnpool1d(2) output length (PyTorch `output_shape`)

    x = jax.random.normal(k_x, (N, C_IN, L_IN), jnp.float32)
    # MaxPool1d(2)-style indices: each pooled position m selects 2m or 2m + 1.
    bits = jax.random.bernoulli(k_idx, 0.5, (N, C_IN, L_IN)).astype(jnp.int32)
    indices = 2 * jnp.arange(L_IN, dtype=jnp.int32)[None, None, :] + bits

    params = make_params(k_p, C_IN, C_OUT)

    out = up_forward(x, indices, L_OUT, params)
    out = jax.block_until_ready(out)

    ref = up_reference(x, indices, L_OUT, params)
    assert out.shape == (N, C_OUT, L_OUT)
    assert jnp.allclose(out, ref, rtol=1e-2, atol=1e-2), "mismatch vs reference"

    print("KERNEL_OK")
</pallas_src>

<mosaic_0001>
module attributes {stable_mosaic.version = 11 : i64} {
  func.func @up_kernel(%arg0: i32, %arg1: memref<16x128xf32, #tpu.memory_space<vmem>>, %arg2: memref<16x128xbf16, #tpu.memory_space<vmem>>, %arg3: memref<1x128xf32, #tpu.memory_space<vmem>>, %arg4: memref<1x128xf32, #tpu.memory_space<vmem>>, %arg5: memref<32x64xbf16, #tpu.memory_space<vmem>>, %arg6: memref<32x1xf32, #tpu.memory_space<vmem>>, %arg7: memref<32x64xbf16, #tpu.memory_space<vmem>>, %arg8: memref<32x1xf32, #tpu.memory_space<vmem>>, %arg9: memref<2x16x128xf32, #tpu.memory_space<vmem>>) attributes {dimension_semantics = [#tpu.dimension_semantics<parallel>], iteration_bounds = array<i64: 1>, scalar_prefetch = 0 : i64, scratch_operands = 0 : i64, tpu.core_type = #tpu.core_type<tc>, window_params = [{transform_indices = @transform_0, window_bounds = array<i64: 16, 128>}, {transform_indices = @transform_1, window_bounds = array<i64: 16, 128>}, {pipeline_mode = #tpu.pipeline_mode<synchronous>, transform_indices = @transform_2, window_bounds = array<i64: 1, 128>}, {pipeline_mode = #tpu.pipeline_mode<synchronous>, transform_indices = @transform_3, window_bounds = array<i64: 1, 128>}, {pipeline_mode = #tpu.pipeline_mode<synchronous>, transform_indices = @transform_4, window_bounds = array<i64: 32, 64>}, {pipeline_mode = #tpu.pipeline_mode<synchronous>, transform_indices = @transform_5, window_bounds = array<i64: 32, 1>}, {pipeline_mode = #tpu.pipeline_mode<synchronous>, transform_indices = @transform_6, window_bounds = array<i64: 32, 64>}, {pipeline_mode = #tpu.pipeline_mode<synchronous>, transform_indices = @transform_7, window_bounds = array<i64: 32, 1>}, {transform_indices = @transform_8, window_bounds = array<i64: 2, 16, 128>}]} {
    %c0 = arith.constant 0 : index
    %c0_0 = arith.constant 0 : index
    %0 = vector.load %arg1[%c0, %c0_0] : memref<16x128xf32, #tpu.memory_space<vmem>>, vector<16x128xf32>
    %c0_1 = arith.constant 0 : index
    %c0_2 = arith.constant 0 : index
    %1 = vector.load %arg2[%c0_1, %c0_2] : memref<16x128xbf16, #tpu.memory_space<vmem>>, vector<16x128xbf16>
    %2 = arith.extf %1 : vector<16x128xbf16> to vector<16x128xf32>
    %c0_3 = arith.constant 0 : index
    %c0_4 = arith.constant 0 : index
    %3 = vector.load %arg3[%c0_3, %c0_4] : memref<1x128xf32, #tpu.memory_space<vmem>>, vector<1x128xf32>
    %c0_5 = arith.constant 0 : index
    %c0_6 = arith.constant 0 : index
    %4 = vector.load %arg4[%c0_5, %c0_6] : memref<1x128xf32, #tpu.memory_space<vmem>>, vector<1x128xf32>
    %5 = arith.mulf %0, %2 : vector<16x128xf32>
    %6 = arith.subf %0, %5 : vector<16x128xf32>
    %cst = arith.constant 0.000000e+00 : f32
    %7 = vector.broadcast %cst : f32 to vector<16x1xf32>
    %8 = vector.extract_strided_slice %5 {offsets = [0, 0], sizes = [16, 127], strides = [1, 1]} : vector<16x128xf32> to vector<16x127xf32>
    %9 = tpu.concatenate %7, %8 in 1 : vector<16x1xf32>, vector<16x127xf32> -> vector<16x128xf32>
    %10 = vector.broadcast %3 : vector<1x128xf32> to vector<16x128xf32>
    %11 = arith.mulf %9, %10 : vector<16x128xf32>
    %cst_7 = arith.constant 0.000000e+00 : f32
    %12 = vector.broadcast %cst_7 : f32 to vector<16x1xf32>
    %13 = vector.extract_strided_slice %6 {offsets = [0, 1], sizes = [16, 127], strides = [1, 1]} : vector<16x128xf32> to vector<16x127xf32>
    %14 = tpu.concatenate %13, %12 in 1 : vector<16x127xf32>, vector<16x1xf32> -> vector<16x128xf32>
    %15 = vector.broadcast %4 : vector<1x128xf32> to vector<16x128xf32>
    %16 = arith.mulf %14, %15 : vector<16x128xf32>
    %17 = arith.truncf %11 : vector<16x128xf32> to vector<16x128xbf16>
    %18 = arith.truncf %6 : vector<16x128xf32> to vector<16x128xbf16>
    %19 = arith.truncf %5 : vector<16x128xf32> to vector<16x128xbf16>
    %20 = arith.truncf %16 : vector<16x128xf32> to vector<16x128xbf16>
    %21 = tpu.concatenate %17, %18, %19, %20 in 0 : vector<16x128xbf16>, vector<16x128xbf16>, vector<16x128xbf16>, vector<16x128xbf16> -> vector<64x128xbf16>
    %c0_8 = arith.constant 0 : index
    %c0_9 = arith.constant 0 : index
    %22 = vector.load %arg5[%c0_8, %c0_9] : memref<32x64xbf16, #tpu.memory_space<vmem>>, vector<32x64xbf16>
    %cst_10 = arith.constant dense<0.000000e+00> : vector<32x128xf32>
    %23 = tpu.matmul %22, %21, %cst_10 {dimension_numbers = #tpu.dot_dimension_numbers<[1], [0], [0], [1], [0, 0, 1, 1], [], []>} : vector<32x64xbf16>, vector<64x128xbf16>, vector<32x128xf32> -> vector<32x128xf32>
    %c0_11 = arith.constant 0 : index
    %c0_12 = arith.constant 0 : index
    %24 = vector.load %arg6[%c0_11, %c0_12] : memref<32x1xf32, #tpu.memory_space<vmem>>, vector<32x1xf32>
    %25 = vector.broadcast %24 : vector<32x1xf32> to vector<32x128xf32>
    %26 = arith.addf %23, %25 : vector<32x128xf32>
    %cst_13 = arith.constant 0.000000e+00 : f32
    %27 = vector.broadcast %cst_13 : f32 to vector<32x128xf32>
    %28 = arith.maximumf %26, %27 : vector<32x128xf32>
    %29 = vector.extract_strided_slice %28 {offsets = [0, 0], sizes = [16, 128], strides = [1, 1]} : vector<32x128xf32> to vector<16x128xf32>
    %30 = vector.extract_strided_slice %28 {offsets = [16, 0], sizes = [16, 128], strides = [1, 1]} : vector<32x128xf32> to vector<16x128xf32>
    %cst_14 = arith.constant 0.000000e+00 : f32
    %31 = vector.broadcast %cst_14 : f32 to vector<16x1xf32>
    %32 = vector.extract_strided_slice %30 {offsets = [0, 0], sizes = [16, 127], strides = [1, 1]} : vector<16x128xf32> to vector<16x127xf32>
    %33 = tpu.concatenate %31, %32 in 1 : vector<16x1xf32>, vector<16x127xf32> -> vector<16x128xf32>
    %34 = vector.broadcast %3 : vector<1x128xf32> to vector<16x128xf32>
    %35 = arith.mulf %33, %34 : vector<16x128xf32>
    %cst_15 = arith.constant 0.000000e+00 : f32
    %36 = vector.broadcast %cst_15 : f32 to vector<16x1xf32>
    %37 = vector.extract_strided_slice %29 {offsets = [0, 1], sizes = [16, 127], strides = [1, 1]} : vector<16x128xf32> to vector<16x127xf32>
    %38 = tpu.concatenate %37, %36 in 1 : vector<16x127xf32>, vector<16x1xf32> -> vector<16x128xf32>
    %39 = vector.broadcast %4 : vector<1x128xf32> to vector<16x128xf32>
    %40 = arith.mulf %38, %39 : vector<16x128xf32>
    %41 = arith.truncf %35 : vector<16x128xf32> to vector<16x128xbf16>
    %42 = arith.truncf %29 : vector<16x128xf32> to vector<16x128xbf16>
    %43 = arith.truncf %30 : vector<16x128xf32> to vector<16x128xbf16>
    %44 = arith.truncf %40 : vector<16x128xf32> to vector<16x128xbf16>
    %45 = tpu.concatenate %41, %42, %43, %44 in 0 : vector<16x128xbf16>, vector<16x128xbf16>, vector<16x128xbf16>, vector<16x128xbf16> -> vector<64x128xbf16>
    %c0_16 = arith.constant 0 : index
    %c0_17 = arith.constant 0 : index
    %46 = vector.load %arg7[%c0_16, %c0_17] : memref<32x64xbf16, #tpu.memory_space<vmem>>, vector<32x64xbf16>
    %cst_18 = arith.constant dense<0.000000e+00> : vector<32x128xf32>
    %47 = tpu.matmul %46, %45, %cst_18 {dimension_numbers = #tpu.dot_dimension_numbers<[1], [0], [0], [1], [0, 0, 1, 1], [], []>} : vector<32x64xbf16>, vector<64x128xbf16>, vector<32x128xf32> -> vector<32x128xf32>
    %c0_19 = arith.constant 0 : index
    %c0_20 = arith.constant 0 : index
    %48 = vector.load %arg8[%c0_19, %c0_20] : memref<32x1xf32, #tpu.memory_space<vmem>>, vector<32x1xf32>
    %49 = vector.broadcast %48 : vector<32x1xf32> to vector<32x128xf32>
    %50 = arith.addf %47, %49 : vector<32x128xf32>
    %cst_21 = arith.constant 0.000000e+00 : f32
    %51 = vector.broadcast %cst_21 : f32 to vector<32x128xf32>
    %52 = arith.maximumf %50, %51 : vector<32x128xf32>
    %53 = vector.extract_strided_slice %52 {offsets = [0, 0], sizes = [16, 128], strides = [1, 1]} : vector<32x128xf32> to vector<16x128xf32>
    %54 = vector.extract_strided_slice %52 {offsets = [16, 0], sizes = [16, 128], strides = [1, 1]} : vector<32x128xf32> to vector<16x128xf32>
    %c0_22 = arith.constant 0 : index
    %c0_23 = arith.constant 0 : index
    %c0_24 = arith.constant 0 : index
    %55 = vector.load %arg9[%c0_22, %c0_23, %c0_24] : memref<2x16x128xf32, #tpu.memory_space<vmem>>, vector<1x16x128xf32>
    %56 = vector.shape_cast %55 : vector<1x16x128xf32> to vector<16x128xf32>
    %57 = vector.shape_cast %53 : vector<16x128xf32> to vector<1x16x128xf32>
    tpu.vector_store %arg9[%c0_22, %c0_23, %c0_24], %57 {strides = array<i32>} : memref<2x16x128xf32, #tpu.memory_space<vmem>>, vector<1x16x128xf32>,
    %c1 = arith.constant 1 : index
    %c0_25 = arith.constant 0 : index
    %c0_26 = arith.constant 0 : index
    %58 = vector.load %arg9[%c1, %c0_25, %c0_26] : memref<2x16x128xf32, #tpu.memory_space<vmem>>, vector<1x16x128xf32>
    %59 = vector.shape_cast %58 : vector<1x16x128xf32> to vector<16x128xf32>
    %60 = vector.shape_cast %54 : vector<16x128xf32> to vector<1x16x128xf32>
    tpu.vector_store %arg9[%c1, %c0_25, %c0_26], %60 {strides = array<i32>} : memref<2x16x128xf32, #tpu.memory_space<vmem>>, vector<1x16x128xf32>,
    return
  }
  func.func @transform_0(%arg0: i32) -> (i32, i32) {
    %c0_i32 = arith.constant 0 : i32
    %c0_i32_0 = arith.constant 0 : i32
    return %c0_i32, %arg0 : i32, i32
  }
  func.func @transform_1(%arg0: i32) -> (i32, i32) {
    %c0_i32 = arith.constant 0 : i32
    %c0_i32_0 = arith.constant 0 : i32
    return %c0_i32, %arg0 : i32, i32
  }
  func.func @transform_2(%arg0: i32) -> (i32, i32) {
    %c0_i32 = arith.constant 0 : i32
    %c0_i32_0 = arith.constant 0 : i32
    %c0_i32_1 = arith.constant 0 : i32
    return %c0_i32, %c0_i32_0 : i32, i32
  }
  func.func @transform_3(%arg0: i32) -> (i32, i32) {
    %c0_i32 = arith.constant 0 : i32
    %c0_i32_0 = arith.constant 0 : i32
    %c0_i32_1 = arith.constant 0 : i32
    return %c0_i32, %c0_i32_0 : i32, i32
  }
  func.func @transform_4(%arg0: i32) -> (i32, i32) {
    %c0_i32 = arith.constant 0 : i32
    %c0_i32_0 = arith.constant 0 : i32
    %c0_i32_1 = arith.constant 0 : i32
    return %c0_i32, %c0_i32_0 : i32, i32
  }
  func.func @transform_5(%arg0: i32) -> (i32, i32) {
    %c0_i32 = arith.constant 0 : i32
    %c0_i32_0 = arith.constant 0 : i32
    %c0_i32_1 = arith.constant 0 : i32
    return %c0_i32, %c0_i32_0 : i32, i32
  }
  func.func @transform_6(%arg0: i32) -> (i32, i32) {
    %c0_i32 = arith.constant 0 : i32
    %c0_i32_0 = arith.constant 0 : i32
    %c0_i32_1 = arith.constant 0 : i32
    return %c0_i32, %c0_i32_0 : i32, i32
  }
  func.func @transform_7(%arg0: i32) -> (i32, i32) {
    %c0_i32 = arith.constant 0 : i32
    %c0_i32_0 = arith.constant 0 : i32
    %c0_i32_1 = arith.constant 0 : i32
    return %c0_i32, %c0_i32_0 : i32, i32
  }
  func.func @transform_8(%arg0: i32) -> (i32, i32, i32) {
    %c0_i32 = arith.constant 0 : i32
    %c0_i32_0 = arith.constant 0 : i32
    %c0_i32_1 = arith.constant 0 : i32
    return %c0_i32, %c0_i32_0, %arg0 : i32, i32, i32
  }
}

</mosaic_0001>

<bundles_post_ra>
// kernel: tpu_custom_call.1
= control target key start
LH: loop header
LB: loop body
LE: loop exit
PB: predicated region body
PF: predicated region fallthrough
CT: control target
= control target key end

     0   :  { %s555_s0 = inlined_call_operand.vmem [shape: f32[16,128], index: 0, kind: input, shape index: {}]   ;;  %s556_s1 = inlined_call_operand.vmem [shape: bf16[16,128], index: 1, kind: input, shape index: {}]   ;;  %s557_s2 = inlined_call_operand.vmem [shape: f32[1,128], index: 2, kind: input, shape index: {}]   ;;  %s558_s3 = inlined_call_operand.vmem [shape: f32[1,128], index: 3, kind: input, shape index: {}]   ;;  %s559_s4 = inlined_call_operand.vmem [shape: bf16[32,64], index: 4, kind: input, shape index: {}]   ;;  %s560_s5 = inlined_call_operand.vmem [shape: f32[32,1], index: 5, kind: input, shape index: {}]   ;;  %s561_s6 = inlined_call_operand.vmem [shape: bf16[32,64], index: 6, kind: input, shape index: {}]   ;;  %s562_s7 = inlined_call_operand.vmem [shape: f32[32,1], index: 7, kind: input, shape index: {}]   ;;  %s563_s8 = inlined_call_operand.hbm [shape: f32[2,16,128], index: 8, kind: output, shape index: {}]  }
   0x1   :  { %v31_v0 = vld [vmem:[%s555_s0] sm:$0xff]  ;;  %v32_v2 = vld [vmem:[%s555_s0 + $0x8] sm:$0xff] }
   0x2   :  { %v340_v1 = vld [vmem:[%s556_s1] sm:$0xff]  }
   0x3   :  { %v341_v3 = vunpack.c.l.bf16 %v340_v1  ;;  %v342_v4 = vunpack.c.h.bf16 %v340_v1 }
   0x5   :  { %v39_v5 = vmul.f32 %v341_v3, %v31_v0  ;;  %v40_v6 = vmul.f32 %v342_v4, %v32_v2 }
   0x6   :  { %13 = vsyncpa [#allocation3], 0  ;;  %s415_s11 = smov 1   ;;  %s416_s12 = smov 127   ;;  %v387_v11 = vld [vmem:[%s559_s4] sm:$0xff]   ;;  %vm123_vm0 = vcmask 523264  }
   0x7   :  { %45 = vrot.lane.b32.xlu0 %v39_v5, %s415_s11  ;;  %v41_v7 = vsub.f32 %v31_v0, %v39_v5  ;;  %v42_v8 = vsub.f32 %v32_v2, %v40_v6  ;;  %v83_v9 = vpack.c.bf16 %v40_v6, %v39_v5  ;;  %363 = vmatprep.mubr.msk.bf16.mxu0 %vm123_vm0, %v387_v11  ;;  %v92_v12 = vld [vmem:[%s560_s5 + $0x18] sm:$0xff]  ;;  %v91_v13 = vld [vmem:[%s560_s5 + $0x10] sm:$0xff]  ;;  %v417_v14 = vmov 0   ;;  %v89_v15 = vld [vmem:[%s560_s5] sm:$0xff] }
   0x8   :  { %386 = vset.pattern.permute.xlu1 %v417_v14  ;;  %385 = vset.pattern.permute.xlu0 %v417_v14  ;;  %v90_v16 = vld [vmem:[%s560_s5 + $0x8] sm:$0xff]  ;;  %vm51_vm1 = vcmask 7168   ;;  %v329_v19 = vld [vmem:[%s557_s2] ss:$0 sm:$0xff]  ;;  %vm70_vm2 = vcmask 1039360   ;;  %v217_v55 = vld [vmem:[%s562_s7 + $0x10] sm:$0xff] }
   0x9   :  { %64 = vrot.lane.b32.xlu1 %v41_v7, %s416_s12  ;;  %v82_v10 = vpack.c.bf16 %v42_v8, %v41_v7  ;;  %v503_v27 = vld [vmem:[%s558_s3] ss:$0 sm:$0xff]  ;;  %v388_v33 = vld [vmem:[%s559_s4 + $0x8] sm:$0xff]   ;;  %v218_v56 = vld [vmem:[%s562_s7 + $0x18] sm:$0xff] }
   0xa   :  { %v215_v52 = vld [vmem:[%s562_s7] sm:$0xff]  ;;  %v216_v53 = vld [vmem:[%s562_s7 + $0x8] sm:$0xff] }
   0xb   :  { %47 = vrot.lane.b32.xlu0 %v40_v6, %s415_s11  ;;  %v389_v54 = vld [vmem:[%s561_s6] sm:$0xff]   ;;  %v390_v7 = vld [vmem:[%s561_s6 + $0x8] sm:$0xff]  }
   0xc   :  { %375 = vmatprep.mubr.msk.bf16.mxu1 %vm123_vm0, %v389_v54 }
   0xd   :  { %66 = vrot.lane.b32.xlu1 %v42_v8, %s416_s12 }
   0xf   :  { %105 = vperm.xlu0 %385, %v91_v13  }
  0x11   :  { %110 = vperm.xlu1 %386, %v92_v12  }
  0x13   :  { %100 = vperm.xlu0 %385, %v90_v16  }
  0x15   :  { %95 = vperm.xlu1 %386, %v89_v15  }
  0x79   :  { %v46_v17 = vpop.permute.xlu0 %45 }
  0x7a   :  { %v52_v20 = vsel %vm51_vm1, 0.0, %v46_v17 }
  0x7b   :  { %v65_v18 = vpop.permute.xlu1 %64  ;;  %v60_v23 = vmul.f32 %v329_v19, %v52_v20 }
  0x7c   :  { %v71_v28 = vsel %vm70_vm2, %v65_v18, 0.0 }
  0x7d   :  { %v48_v21 = vpop.permute.xlu0 %47  ;;  %v79_v30 = vmul.f32 %v503_v27, %v71_v28 }
  0x7e   :  { %v53_v22 = vsel %vm51_vm1, 0.0, %v48_v21 }
  0x7f   :  { %v61_v24 = vmul.f32 %v329_v19, %v53_v22  ;;  %v67_v26 = vpop.permute.xlu1 %66 }
  0x80   :  { %v72_v29 = vsel %vm70_vm2, %v67_v26, 0.0 }
  0x81   :  { %v81_v25 = vpack.c.bf16 %v61_v24, %v60_v23  ;;  %v80_v31 = vmul.f32 %v503_v27, %v72_v29 }
  0x83   :  { %355 = vmatprep.subr.bf16.mxu0 %v81_v25  ;;  %v84_v32 = vpack.c.bf16 %v80_v31, %v79_v30 }
  0x84   :  { %356 = vmatpush3.bf16.msra.mxu0 %v81_v25 }
  0x85   :  { %357 = vmatprep.subr.bf16.mxu0 %v82_v10 }
  0x88   :  { %358 = vmatpush3.bf16.msra.mxu0 %v82_v10 }
  0x89   :  { %359 = vmatprep.subr.bf16.mxu0 %v83_v9 }
  0x8c   :  { %360 = vmatpush3.bf16.msra.mxu0 %v83_v9 }
  0x8d   :  { %361 = vmatprep.subr.bf16.mxu0 %v84_v32 }
  0x8e   :  { %v106_v35 = vpop.permute.xlu0 %105 }
  0x90   :  { %362 = vmatpush3.bf16.msra.mxu0 %v84_v32  ;;  %v111_v34 = vpop.permute.xlu1 %110 }
  0x92   :  { %v101_v40 = vpop.permute.xlu0 %100 }
  0x93   :  { %364 = vmatmul.mubr.msk.bf16.vlgmr.msra.gmra.mrb[0].mxu0 %vm123_vm0, %v388_v33 }
  0x94   :  { %v96_v36 = vpop.permute.xlu1 %95 }
 0x166   :  { %v365_v37 = vpop.f32.mrb[0].mxu0 }
 0x167   :  { %v173_v38 = vadd.f32 %v365_v37, %v106_v35  ;;  %v164_v39 = vpop.f32.mrb[1].mxu0 }
 0x168   :  { %v165_v41 = vadd.f32 %v164_v39, %v96_v36  ;;  %v366_v42 = vpop.f32.mrb[2].mxu0 }
 0x169   :  { %v181_v43 = vmax.f32 %v173_v38, 0.0  ;;  %v176_v44 = vadd.f32 %v366_v42, %v111_v34  ;;  %v167_v45 = vpop.f32.mrb[3].mxu0 }
 0x16a   :  { %v168_v46 = vadd.f32 %v167_v45, %v101_v40  ;;  %v179_v48 = vmax.f32 %v165_v41, 0.0 }
 0x16b   :  { %v182_v47 = vmax.f32 %v176_v44, 0.0  ;;  %185 = vrot.lane.b32.xlu1 %v181_v43, %s415_s11 }
 0x16c   :  { %v180_v49 = vmax.f32 %v168_v46, 0.0 }
 0x16d   :  { %v209_v50 = vpack.c.bf16 %v182_v47, %v181_v43  ;;  %187 = vrot.lane.b32.xlu0 %v182_v47, %s415_s11 }
 0x16e   :  { %v208_v51 = vpack.c.bf16 %v180_v49, %v179_v48 }
 0x16f   :  { %197 = vrot.lane.b32.xlu1 %v179_v48, %s416_s12 }
 0x171   :  { %199 = vrot.lane.b32.xlu0 %v180_v49, %s416_s12  ;;  %s418_s12 = smov [#allocation2]  }
 0x172   :  { %s318_s0 = sshll.u32 %s418_s12, 4  ;;  %s319_s0 = int_to_ptr.vmem [resolvable:$true] %s318_s0 }
 0x173   :  { %221 = vperm.xlu1 %386, %v215_v52   ;;  %s391_s6 = scalar_lea.vmem %s319_s0, 512  ;;  %p396_p1 = scmp.lt.s32.totalorder %s319_s0, %s319_s0 }
 0x174   :  { %p392_p0 = scmp.ne.s32.totalorder %s319_s0, %s391_s6  ;;  %p397_p2 = scmp.lt.s32.totalorder %s391_s6, %s391_s6 }
 0x175   :  { %226 = vperm.xlu0 %385, %v216_v53  }
 0x176   :  { %p398_p3 = por %p397_p2, %p396_p1 }
 0x177   :  { %231 = vperm.xlu1 %386, %v217_v55  }
 0x178   :  { %p399_p4 = pnand %p398_p3, %p392_p0 }
 0x179   :  { %236 = vperm.xlu0 %385, %v218_v56  }
 0x1dd   :  { %v186_v57 = vpop.permute.xlu1 %185 }
 0x1de   :  { %v191_v58 = vsel %vm51_vm1, 0.0, %v186_v57 }
 0x1df   :  { %v188_v59 = vpop.permute.xlu0 %187  ;;  %v193_v61 = vmul.f32 %v329_v19, %v191_v58 }
 0x1e0   :  { %v192_v60 = vsel %vm51_vm1, 0.0, %v188_v59 }
 0x1e1   :  { %v194_v62 = vmul.f32 %v329_v19, %v192_v60  ;;  %v198_v1 = vpop.permute.xlu1 %197 }
 0x1e2   :  { %v203_v3 = vsel %vm70_vm2, %v198_v1, 0.0 }
 0x1e3   :  { %v200_v63 = vpop.permute.xlu0 %199  ;;  %v207_v0 = vpack.c.bf16 %v194_v62, %v193_v61  ;;  %v205_v5 = vmul.f32 %v503_v27, %v203_v3 }
 0x1e4   :  { %v204_v2 = vsel %vm70_vm2, %v200_v63, 0.0 }
 0x1e5   :  { %367 = vmatprep.subr.bf16.mxu1 %v207_v0  ;;  %v206_v4 = vmul.f32 %v503_v27, %v204_v2 }
 0x1e6   :  { %368 = vmatpush3.bf16.msra.mxu1 %v207_v0 }
 0x1e7   :  { %369 = vmatprep.subr.bf16.mxu1 %v208_v51  ;;  %v210_v6 = vpack.c.bf16 %v206_v4, %v205_v5 }
 0x1ea   :  { %370 = vmatpush3.bf16.msra.mxu1 %v208_v51 }
 0x1eb   :  { %371 = vmatprep.subr.bf16.mxu1 %v209_v50 }
 0x1ee   :  { %372 = vmatpush3.bf16.msra.mxu1 %v209_v50 }
 0x1ef   :  { %373 = vmatprep.subr.bf16.mxu1 %v210_v6 }
 0x1f2   :  { %374 = vmatpush3.bf16.msra.mxu1 %v210_v6  ;;  %v222_v8 = vpop.permute.xlu1 %221 }
 0x1f4   :  { %v227_v9 = vpop.permute.xlu0 %226 }
 0x1f5   :  { %376 = vmatmul.mubr.msk.bf16.vlgmr.msra.gmra.mrb[0].mxu1 %vm123_vm0, %v390_v7 }
 0x1f6   :  { %v232_v10 = vpop.permute.xlu1 %231 }
 0x1f8   :  { %v237_v14 = vpop.permute.xlu0 %236 }
 0x2c8   :  { %v377_v11 = vpop.f32.mrb[0].mxu1 }
 0x2c9   :  { %v298_v12 = vadd.f32 %v377_v11, %v232_v10  ;;  %v289_v13 = vpop.f32.mrb[1].mxu1 }
 0x2ca   :  { %v290_v15 = vadd.f32 %v289_v13, %v222_v8  ;;  %v378_v16 = vpop.f32.mrb[2].mxu1 }
 0x2cb   :  { %v306_v17 = vmax.f32 %v298_v12, 0.0  ;;  %v301_v18 = vadd.f32 %v378_v16, %v237_v14  ;;  %v292_v19 = vpop.f32.mrb[3].mxu1 }
 0x2cc   :  { %v304_v20 = vmax.f32 %v290_v15, 0.0  ;;  %v293_v21 = vadd.f32 %v292_v19, %v227_v9 }
 0x2cd   :  { %311 = vst [vmem:[#allocation2 + $0x10] sm:$0xff] %v306_v17  ;;  %v307_v22 = vmax.f32 %v301_v18, 0.0 }
 0x2ce   :  { %308 = vst [vmem:[#allocation2] sm:$0xff] %v304_v20  ;;  %v305_v23 = vmax.f32 %v293_v21, 0.0 }
 0x2cf   :  { %312 = vst [vmem:[#allocation2 + $0x18] sm:$0xff] %v307_v22 }
 0x2d0   :  { %309 = vst [vmem:[#allocation2 + $0x8] sm:$0xff] %v305_v23 }
 0x2d1   :  { %402 = shalt.err (!%p399_p4)
}
 0x2d2   :  { %s403_s14 = scalar_lea.hbm %s563_s8, 512 }
 0x2d3   :  { %p404_p5 = scmp.ne.s32.totalorder %s563_s8, %s403_s14  ;;  %p407_p6 = scmp.lt.u32.totalorder %s403_s14, %s563_s8 }
 0x2d5   :  { %p409_p7 = pnand %p407_p6, %p404_p5 }
 0x2d7   :  { %412 = shalt.err (!%p409_p7)
}
 0x2d8   :  { %s419_s19 = smov 128   ;;  %s420_s20 = smov 8  }
 0x2d9   :  { %324 = dma.vmem_to_hbm [thread:$0]  %s319_s0, 512, %s563_s8, [#allocation3], %s419_s19, %s419_s19, %s420_s20  }
 0x2da   :  { %413 = dma.done.wait [#allocation3], 512  }
 0x2db   :  { %414 = vsyncadd [#allocation3], 4294966784 }
 0x2dc   :  { %328 = vsyncpa [#allocation3], 1 }

</bundles_post_ra>
